<compile_context>
chip_gen: v5e
topology: v5e:2x2
jax: 0.10.0
libtpu: 0.0.40
codegen_flags: <defaults>
</compile_context>

<pallas_src>
import jax
import jax.numpy as jnp
from jax.experimental import pallas as pl
from jax.experimental.pallas import tpu as pltpu

EPS = 1e-5


def _round_up(x, m):
    return (x + m - 1) // m * m


def _layer_norm_f32(resid, gamma, beta):
    """LayerNorm over last dim in f32; fused single-pass mean / E[x^2] stats."""
    inv_d = 1.0 / resid.shape[-1]
    mean = jnp.sum(resid, axis=-1, keepdims=True) * inv_d
    mean_sq = jnp.sum(resid * resid, axis=-1, keepdims=True) * inv_d
    var = mean_sq - mean * mean
    return (resid - mean) * jax.lax.rsqrt(var + EPS) * gamma + beta


# ---------------------------------------------------------------------------
# MambaBlock kernels: grid = (row_tiles, n_tiles of the mixer weight)
# ---------------------------------------------------------------------------

def _mamba_block_kernel(h_ref, r_ref, gamma_ref, beta_ref, w_ref, b_ref,
                        out_ref, resid_out_ref, normed_scr):
    @pl.when(pl.program_id(1) == 0)
    def _():
        resid = h_ref[...].astype(jnp.float32) + r_ref[...].astype(jnp.float32)
        resid_out_ref[...] = resid                      # residual_in_fp32
        normed = _layer_norm_f32(resid,
                                 gamma_ref[...].astype(jnp.float32),
                                 beta_ref[...].astype(jnp.float32))
        normed_scr[...] = normed.astype(normed_scr.dtype)   # bf16 MXU operand

    out_ref[...] = (
        jnp.dot(normed_scr[...], w_ref[...], preferred_element_type=jnp.float32)
        + b_ref[...].astype(jnp.float32)
    ).astype(out_ref.dtype)


def _mamba_block_kernel_first(h_ref, gamma_ref, beta_ref, w_ref, b_ref,
                              out_ref, resid_out_ref, normed_scr):
    # residual=None specialization: no residual read at all.
    @pl.when(pl.program_id(1) == 0)
    def _():
        resid = h_ref[...].astype(jnp.float32)
        resid_out_ref[...] = resid
        normed = _layer_norm_f32(resid,
                                 gamma_ref[...].astype(jnp.float32),
                                 beta_ref[...].astype(jnp.float32))
        normed_scr[...] = normed.astype(normed_scr.dtype)

    out_ref[...] = (
        jnp.dot(normed_scr[...], w_ref[...], preferred_element_type=jnp.float32)
        + b_ref[...].astype(jnp.float32)
    ).astype(out_ref.dtype)


def mamba_block_forward(hidden_states, residual, gamma, beta, w_mixer, b_mixer,
                        *, row_tile=256, col_tile=None):
    """One MambaBlock: add + LayerNorm(f32) + mixer projection.

    Returns (mixer_out in the input dtype, residual in float32)."""
    B, S, D = hidden_states.shape
    R = B * S
    out_dtype = hidden_states.dtype

    # Large row tiles feed the MXU and amortize the ~0.35us grid-step overhead;
    # clamp to the (8-aligned) problem size and pad rows instead of asserting.
    rt = min(row_tile, _round_up(R, 8))
    Rp = _round_up(R, rt)

    # Tile the mixer weight along N so its VMEM footprint stays bounded on
    # v7x (64 MiB physical); small D keeps the whole (bf16) weight resident.
    if col_tile is None:
        col_tile = D if D <= 2048 else 512
    tn = col_tile
    if D % tn != 0 or (tn != D and tn % 128 != 0):
        tn = D

    num_i, num_j = Rp // rt, D // tn

    h2 = hidden_states.reshape(R, D)
    if Rp != R:
        h2 = jnp.pad(h2, ((0, Rp - R), (0, 0)))

    gamma2 = gamma.reshape(1, D).astype(jnp.float32)
    beta2 = beta.reshape(1, D).astype(jnp.float32)
    b2 = b_mixer.reshape(1, D).astype(jnp.float32)
    w2 = w_mixer.astype(jnp.bfloat16)       # bf16 operands, f32 accumulation

    row_spec = pl.BlockSpec((rt, D), lambda i, j: (i, 0))
    vec_spec = pl.BlockSpec((1, D), lambda i, j: (0, 0))
    w_spec = pl.BlockSpec((D, tn), lambda i, j: (0, j))
    bias_spec = pl.BlockSpec((1, tn), lambda i, j: (0, j))
    out_spec = pl.BlockSpec((rt, tn), lambda i, j: (i, j))

    if residual is not None:
        r2 = residual.reshape(R, D)
        if Rp != R:
            r2 = jnp.pad(r2, ((0, Rp - R), (0, 0)))
        kernel = _mamba_block_kernel
        operands = (h2, r2, gamma2, beta2, w2, b2)
        in_specs = [row_spec, row_spec, vec_spec, vec_spec, w_spec, bias_spec]
    else:
        kernel = _mamba_block_kernel_first
        operands = (h2, gamma2, beta2, w2, b2)
        in_specs = [row_spec, vec_spec, vec_spec, w_spec, bias_spec]

    out, resid_out = pl.pallas_call(
        kernel,
        grid_spec=pltpu.PrefetchScalarGridSpec(
            num_scalar_prefetch=0,
            grid=(num_i, num_j),
            in_specs=in_specs,
            out_specs=[out_spec, row_spec],
            scratch_shapes=[pltpu.VMEM((rt, D), jnp.bfloat16)],
        ),
        out_shape=[
            jax.ShapeDtypeStruct((Rp, D), out_dtype),      # mixer output
            jax.ShapeDtypeStruct((Rp, D), jnp.float32),    # fp32 residual
        ],
        # Rows shard across TensorCores (v7x megacore); the N axis is
        # sequential since it reuses the normed VMEM scratch from j==0.
        compiler_params=pltpu.CompilerParams(
            dimension_semantics=("parallel", "arbitrary")),
        # NOTE: at large D raise vmem_limit_bytes and/or lower col_tile; the
        # demo shapes fit well inside the default scoped VMEM limit.
    )(*operands)

    return out[:R].reshape(B, S, D), resid_out[:R].reshape(B, S, D)


# ---------------------------------------------------------------------------
# Final add + RMSNorm (final_layernorm, fp32 weight)
# ---------------------------------------------------------------------------

def _final_rmsnorm_kernel(h_ref, r_ref, w_ref, out_ref):
    resid = h_ref[...].astype(jnp.float32) + r_ref[...].astype(jnp.float32)
    ms = jnp.sum(resid * resid, axis=-1, keepdims=True) * (1.0 / resid.shape[-1])
    out_ref[...] = (resid * jax.lax.rsqrt(ms + EPS)
                    * w_ref[...].astype(jnp.float32)).astype(out_ref.dtype)


def _final_rmsnorm_kernel_nores(h_ref, w_ref, out_ref):
    resid = h_ref[...].astype(jnp.float32)
    ms = jnp.sum(resid * resid, axis=-1, keepdims=True) * (1.0 / resid.shape[-1])
    out_ref[...] = (resid * jax.lax.rsqrt(ms + EPS)
                    * w_ref[...].astype(jnp.float32)).astype(out_ref.dtype)


def final_rmsnorm_forward(hidden_states, residual, weight, *, row_tile=256):
    B, S, D = hidden_states.shape
    R = B * S
    rt = min(row_tile, _round_up(R, 8))
    Rp = _round_up(R, rt)

    h2 = hidden_states.reshape(R, D)
    if Rp != R:
        h2 = jnp.pad(h2, ((0, Rp - R), (0, 0)))
    w2 = weight.reshape(1, D).astype(jnp.float32)

    row_spec = pl.BlockSpec((rt, D), lambda i: (i, 0))
    vec_spec = pl.BlockSpec((1, D), lambda i: (0, 0))

    if residual is not None:
        r2 = residual.reshape(R, D)
        if Rp != R:
            r2 = jnp.pad(r2, ((0, Rp - R), (0, 0)))
        kernel, operands = _final_rmsnorm_kernel, (h2, r2, w2)
        in_specs = [row_spec, row_spec, vec_spec]
    else:
        kernel, operands = _final_rmsnorm_kernel_nores, (h2, w2)
        in_specs = [row_spec, vec_spec]

    out = pl.pallas_call(
        kernel,
        grid_spec=pltpu.PrefetchScalarGridSpec(
            num_scalar_prefetch=0,
            grid=(Rp // rt,),
            in_specs=in_specs,
            out_specs=row_spec,
        ),
        out_shape=jax.ShapeDtypeStruct((Rp, D), jnp.float32),
        compiler_params=pltpu.CompilerParams(
            dimension_semantics=("parallel",)),
    )(*operands)

    return out[:R].reshape(B, S, D)


# ---------------------------------------------------------------------------
# MambaDecoder: stack of MambaBlocks + final RMSNorm
# ---------------------------------------------------------------------------

def mamba_decoder_forward(hidden_states, layer_params, final_norm_weight,
                          *, row_tile=256, col_tile=None):
    residual = None
    for (gamma, beta, w_mixer, b_mixer) in layer_params:
        hidden_states, residual = mamba_block_forward(
            hidden_states, residual, gamma, beta, w_mixer, b_mixer,
            row_tile=row_tile, col_tile=col_tile)
    return final_rmsnorm_forward(hidden_states, residual, final_norm_weight,
                                 row_tile=row_tile)


# ---------------------------------------------------------------------------
# Pure-JAX reference (matches kernel numerics: f32 norm, bf16 matmul operands)
# ---------------------------------------------------------------------------

def _reference_decoder(hidden_states, layer_params, final_norm_weight):
    h = hidden_states
    residual = None
    for (gamma, beta, w, b) in layer_params:
        resid = h.astype(jnp.float32)
        if residual is not None:
            resid = resid + residual
        mean = jnp.mean(resid, axis=-1, keepdims=True)
        var = jnp.mean((resid - mean) ** 2, axis=-1, keepdims=True)
        normed = (resid - mean) * jax.lax.rsqrt(var + EPS)
        normed = normed * gamma.astype(jnp.float32) + beta.astype(jnp.float32)
        out = (jnp.dot(normed.astype(jnp.bfloat16), w.astype(jnp.bfloat16),
                       preferred_element_type=jnp.float32)
               + b.astype(jnp.float32))
        h = out.astype(hidden_states.dtype)
        residual = resid
    resid = h.astype(jnp.float32) + residual
    ms = jnp.mean(resid * resid, axis=-1, keepdims=True)
    return resid * jax.lax.rsqrt(ms + EPS) * final_norm_weight.astype(jnp.float32)


if __name__ == "__main__":
    key = jax.random.PRNGKey(0)
    B, S, D = 2, 8, 128          # small, but lane-dense (D multiple of 128)
    num_layers = 2
    model_dtype = jnp.bfloat16   # inputs/outputs stay in the model dtype

    keys = jax.random.split(key, 1 + 4 * num_layers + 1)
    hidden = jax.random.normal(keys[0], (B, S, D), jnp.float32).astype(model_dtype)

    layer_params = []
    for l in range(num_layers):
        kg, kbe, kw, kb = keys[1 + 4 * l: 5 + 4 * l]
        gamma = 1.0 + 0.1 * jax.random.normal(kg, (D,), jnp.float32)
        beta = 0.05 * jax.random.normal(kbe, (D,), jnp.float32)
        w = jax.random.normal(kw, (D, D), jnp.float32) * 0.02
        b = jax.random.normal(kb, (D,), jnp.float32) * 0.01
        layer_params.append((gamma, beta, w, b))
    final_w = 1.0 + 0.1 * jax.random.normal(keys[-1], (D,), jnp.float32)

    out = mamba_decoder_forward(hidden, layer_params, final_w)
    out = jax.block_until_ready(out)

    ref = _reference_decoder(hidden, layer_params, final_w)
    assert out.shape == (B, S, D) and out.dtype == jnp.float32
    assert jnp.allclose(out, ref, atol=5e-2, rtol=5e-2), \
        float(jnp.max(jnp.abs(out - ref)))
    print("KERNEL_OK")
</pallas_src>

<mosaic_0001>
module attributes {stable_mosaic.version = 11 : i64} {
  func.func @_mamba_block_kernel_first(%arg0: i32, %arg1: i32, %arg2: memref<16x128xbf16, #tpu.memory_space<vmem>>, %arg3: memref<1x128xf32, #tpu.memory_space<vmem>>, %arg4: memref<1x128xf32, #tpu.memory_space<vmem>>, %arg5: memref<128x128xbf16, #tpu.memory_space<vmem>>, %arg6: memref<1x128xf32, #tpu.memory_space<vmem>>, %arg7: memref<16x128xbf16, #tpu.memory_space<vmem>>, %arg8: memref<16x128xf32, #tpu.memory_space<vmem>>, %arg9: memref<16x128xbf16, #tpu.memory_space<vmem>>) attributes {dimension_semantics = [#tpu.dimension_semantics<parallel>, #tpu.dimension_semantics<arbitrary>], iteration_bounds = array<i64: 1, 1>, scalar_prefetch = 0 : i64, scratch_operands = 1 : i64, tpu.core_type = #tpu.core_type<tc>, window_params = [{transform_indices = @transform_0, window_bounds = array<i64: 16, 128>}, {pipeline_mode = #tpu.pipeline_mode<synchronous>, transform_indices = @transform_1, window_bounds = array<i64: 1, 128>}, {pipeline_mode = #tpu.pipeline_mode<synchronous>, transform_indices = @transform_2, window_bounds = array<i64: 1, 128>}, {transform_indices = @transform_3, window_bounds = array<i64: 128, 128>}, {transform_indices = @transform_4, window_bounds = array<i64: 1, 128>}, {transform_indices = @transform_5, window_bounds = array<i64: 16, 128>}, {transform_indices = @transform_6, window_bounds = array<i64: 16, 128>}]} {
    %c0_i32 = arith.constant 0 : i32
    %0 = arith.cmpi eq, %arg1, %c0_i32 : i32
    %1 = arith.extui %0 : i1 to i32
    %c0_i32_0 = arith.constant 0 : i32
    %2 = arith.cmpi ne, %1, %c0_i32_0 : i32
    scf.if %2 {
      %c0_8 = arith.constant 0 : index
      %c0_9 = arith.constant 0 : index
      %11 = vector.load %arg2[%c0_8, %c0_9] : memref<16x128xbf16, #tpu.memory_space<vmem>>, vector<16x128xbf16>
      %12 = arith.extf %11 : vector<16x128xbf16> to vector<16x128xf32>
      %c0_10 = arith.constant 0 : index
      %c0_11 = arith.constant 0 : index
      %13 = vector.load %arg8[%c0_10, %c0_11] : memref<16x128xf32, #tpu.memory_space<vmem>>, vector<16x128xf32>
      tpu.vector_store %arg8[%c0_10, %c0_11], %12 {strides = array<i32>} : memref<16x128xf32, #tpu.memory_space<vmem>>, vector<16x128xf32>,
      %c0_12 = arith.constant 0 : index
      %c0_13 = arith.constant 0 : index
      %14 = vector.load %arg3[%c0_12, %c0_13] : memref<1x128xf32, #tpu.memory_space<vmem>>, vector<1x128xf32>
      %c0_14 = arith.constant 0 : index
      %c0_15 = arith.constant 0 : index
      %15 = vector.load %arg4[%c0_14, %c0_15] : memref<1x128xf32, #tpu.memory_space<vmem>>, vector<1x128xf32>
      %cst_16 = arith.constant dense<0.000000e+00> : vector<16xf32>
      %16 = vector.multi_reduction <add>, %12, %cst_16 [1] : vector<16x128xf32> to vector<16xf32>
      %17 = vector.shape_cast %16 : vector<16xf32> to vector<16x1xf32>
      %cst_17 = arith.constant 7.812500e-03 : f32
      %18 = vector.broadcast %cst_17 : f32 to vector<16x1xf32>
      %19 = arith.mulf %17, %18 : vector<16x1xf32>
      %20 = arith.mulf %12, %12 : vector<16x128xf32>
      %cst_18 = arith.constant dense<0.000000e+00> : vector<16xf32>
      %21 = vector.multi_reduction <add>, %20, %cst_18 [1] : vector<16x128xf32> to vector<16xf32>
      %22 = vector.shape_cast %21 : vector<16xf32> to vector<16x1xf32>
      %cst_19 = arith.constant 7.812500e-03 : f32
      %23 = vector.broadcast %cst_19 : f32 to vector<16x1xf32>
      %24 = arith.mulf %22, %23 : vector<16x1xf32>
      %25 = arith.mulf %19, %19 : vector<16x1xf32>
      %26 = arith.subf %24, %25 : vector<16x1xf32>
      %27 = vector.broadcast %19 : vector<16x1xf32> to vector<16x128xf32>
      %28 = arith.subf %12, %27 : vector<16x128xf32>
      %cst_20 = arith.constant 9.99999974E-6 : f32
      %29 = vector.broadcast %cst_20 : f32 to vector<16x1xf32>
      %30 = arith.addf %26, %29 : vector<16x1xf32>
      %31 = math.rsqrt %30 : vector<16x1xf32>
      %32 = vector.broadcast %31 : vector<16x1xf32> to vector<16x128xf32>
      %33 = arith.mulf %28, %32 : vector<16x128xf32>
      %34 = vector.broadcast %14 : vector<1x128xf32> to vector<16x128xf32>
      %35 = arith.mulf %33, %34 : vector<16x128xf32>
      %36 = vector.broadcast %15 : vector<1x128xf32> to vector<16x128xf32>
      %37 = arith.addf %35, %36 : vector<16x128xf32>
      %38 = arith.truncf %37 : vector<16x128xf32> to vector<16x128xbf16>
      %c0_21 = arith.constant 0 : index
      %c0_22 = arith.constant 0 : index
      %39 = vector.load %arg9[%c0_21, %c0_22] : memref<16x128xbf16, #tpu.memory_space<vmem>>, vector<16x128xbf16>
      tpu.vector_store %arg9[%c0_21, %c0_22], %38 {strides = array<i32>} : memref<16x128xbf16, #tpu.memory_space<vmem>>, vector<16x128xbf16>,
    } else {
    }
    %c0 = arith.constant 0 : index
    %c0_1 = arith.constant 0 : index
    %3 = vector.load %arg9[%c0, %c0_1] : memref<16x128xbf16, #tpu.memory_space<vmem>>, vector<16x128xbf16>
    %c0_2 = arith.constant 0 : index
    %c0_3 = arith.constant 0 : index
    %4 = vector.load %arg5[%c0_2, %c0_3] : memref<128x128xbf16, #tpu.memory_space<vmem>>, vector<128x128xbf16>
    %cst = arith.constant dense<0.000000e+00> : vector<16x128xf32>
    %5 = tpu.matmul %3, %4, %cst {dimension_numbers = #tpu.dot_dimension_numbers<[1], [0], [0], [1], [0, 0, 1, 1], [], []>} : vector<16x128xbf16>, vector<128x128xbf16>, vector<16x128xf32> -> vector<16x128xf32>
    %c0_4 = arith.constant 0 : index
    %c0_5 = arith.constant 0 : index
    %6 = vector.load %arg6[%c0_4, %c0_5] : memref<1x128xf32, #tpu.memory_space<vmem>>, vector<1x128xf32>
    %7 = vector.broadcast %6 : vector<1x128xf32> to vector<16x128xf32>
    %8 = arith.addf %5, %7 : vector<16x128xf32>
    %9 = arith.truncf %8 : vector<16x128xf32> to vector<16x128xbf16>
    %c0_6 = arith.constant 0 : index
    %c0_7 = arith.constant 0 : index
    %10 = vector.load %arg7[%c0_6, %c0_7] : memref<16x128xbf16, #tpu.memory_space<vmem>>, vector<16x128xbf16>
    tpu.vector_store %arg7[%c0_6, %c0_7], %9 {strides = array<i32>} : memref<16x128xbf16, #tpu.memory_space<vmem>>, vector<16x128xbf16>,
    return
  }
  func.func @transform_0(%arg0: i32, %arg1: i32) -> (i32, i32) {
    %c0_i32 = arith.constant 0 : i32
    %c0_i32_0 = arith.constant 0 : i32
    return %arg0, %c0_i32 : i32, i32
  }
  func.func @transform_1(%arg0: i32, %arg1: i32) -> (i32, i32) {
    %c0_i32 = arith.constant 0 : i32
    %c0_i32_0 = arith.constant 0 : i32
    %c0_i32_1 = arith.constant 0 : i32
    return %c0_i32, %c0_i32_0 : i32, i32
  }
  func.func @transform_2(%arg0: i32, %arg1: i32) -> (i32, i32) {
    %c0_i32 = arith.constant 0 : i32
    %c0_i32_0 = arith.constant 0 : i32
    %c0_i32_1 = arith.constant 0 : i32
    return %c0_i32, %c0_i32_0 : i32, i32
  }
  func.func @transform_3(%arg0: i32, %arg1: i32) -> (i32, i32) {
    %c0_i32 = arith.constant 0 : i32
    %c0_i32_0 = arith.constant 0 : i32
    return %c0_i32, %arg1 : i32, i32
  }
  func.func @transform_4(%arg0: i32, %arg1: i32) -> (i32, i32) {
    %c0_i32 = arith.constant 0 : i32
    %c0_i32_0 = arith.constant 0 : i32
    return %c0_i32, %arg1 : i32, i32
  }
  func.func @transform_5(%arg0: i32, %arg1: i32) -> (i32, i32) {
    %c0_i32 = arith.constant 0 : i32
    return %arg0, %arg1 : i32, i32
  }
  func.func @transform_6(%arg0: i32, %arg1: i32) -> (i32, i32) {
    %c0_i32 = arith.constant 0 : i32
    %c0_i32_0 = arith.constant 0 : i32
    return %arg0, %c0_i32 : i32, i32
  }
}

</mosaic_0001>

<bundles_post_ra>
// kernel: tpu_custom_call.1
= control target key start
LH: loop header
LB: loop body
LE: loop exit
PB: predicated region body
PF: predicated region fallthrough
CT: control target
= control target key end

     0   :  { %12 = vsyncpa [#allocation4], 0  ;;  %s555_s0 = inlined_call_operand.hbm [shape: bf16[16,128], index: 0, kind: input, shape index: {}]   ;;  %s556_s1 = inlined_call_operand.hbm [shape: f32[1,128], index: 1, kind: input, shape index: {}]   ;;  %s557_s2 = inlined_call_operand.vmem [shape: f32[1,128], index: 2, kind: input, shape index: {}]   ;;  %s558_s3 = inlined_call_operand.hbm [shape: bf16[128,128], index: 3, kind: input, shape index: {}]   ;;  %s559_s4 = inlined_call_operand.vmem [shape: f32[1,128], index: 4, kind: input, shape index: {}]   ;;  %s560_s5 = inlined_call_operand.hbm [shape: bf16[16,128], index: 5, kind: output, shape index: {0}]   ;;  %s561_s6 = inlined_call_operand.hbm [shape: f32[16,128], index: 6, kind: output, shape index: {1}]  }
   0x1   :  { %13 = vsyncpa [#allocation7], 0 }
   0x2   :  { %14 = vsyncpa [#allocation5], 0  ;;  %s34_s23 = sshll.u32 %s556_s1, 4  ;;  %s35_s23 = int_to_ptr.hbm [resolvable:$true] %s34_s23 }
   0x3   :  { %15 = vsyncpa [#allocation11], 0  ;;  %s474_s24 = smov [#allocation6]   ;;  %s20_s28 = sshll.u32 %s555_s0, 4  ;;  %s21_s28 = int_to_ptr.hbm [resolvable:$true] %s20_s28 }
   0x4   :  { %s36_s25 = sshll.u32 %s474_s24, 4  ;;  %s475_s29 = smov [#allocation3]   ;;  %s37_s25 = int_to_ptr.vmem [resolvable:$true] %s36_s25 }
   0x5   :  { %39 = dma.hbm_to_vmem [thread:$0]  %s35_s23, 16, %s37_s25, [#allocation7]  }
   0x6   :  { %s22_s30 = sshll.u32 %s475_s29, 4  ;;  %s476_s7 = smov 64   ;;  %s23_s30 = int_to_ptr.vmem [resolvable:$true] %s22_s30 }
   0x7   :  { %s477_s8 = smov 4   ;;  %s46_s10 = sshll.u32 %s558_s3, 4  ;;  %s47_s10 = int_to_ptr.hbm [resolvable:$true] %s46_s10 }
   0x8   :  { %28 = dma.hbm_to_vmem [thread:$0]  %s21_s28, 128, %s23_s30, [#allocation4], %s476_s7, %s476_s7, %s477_s8  }
   0x9   :  { %s478_s11 = smov [#allocation8]  }
   0xa   :  { %s48_s12 = sshll.u32 %s478_s11, 4  ;;  %s49_s12 = int_to_ptr.vmem [resolvable:$true] %s48_s12 }
   0xb   :  { %54 = dma.hbm_to_vmem [thread:$0]  %s47_s10, 1024, %s49_s12, [#allocation7], %s476_s7, %s476_s7, %s477_s8  }
   0xc   :  { %466 = dma.done.wait [#allocation4], 128  }
   0xd   :  { %467 = vsyncadd [#allocation4], 4294967168 }
   0xe   :  { %468 = dma.done.wait [#allocation7], 1040  }
   0xf   :  { %469 = vsyncadd [#allocation7], 4294966256  ;;  %v317_v0 = vld [vmem:[#allocation3] sm:$0xff]   ;;  %v313_v7 = vld [vmem:[#allocation8 + $0x28] sm:$0xff]  ;;  %s479_s13 = smov [#allocation10]   ;;  %s252_s17 = sshll.u32 %s561_s6, 4  ;;  %s253_s17 = int_to_ptr.hbm [resolvable:$true] %s252_s17 }
  0x10   :  { %v318_v1 = vunpack.c.l.bf16 %v317_v0  ;;  %v533_v2 = vunpack.c.h.bf16 %v317_v0  ;;  %v315_v5 = vld [vmem:[#allocation8 + $0x38] sm:$0xff]  ;;  %v314_v6 = vld [vmem:[#allocation8 + $0x30] sm:$0xff]  ;;  %v312_v8 = vld [vmem:[#allocation8 + $0x20] sm:$0xff]  ;;  %s250_s14 = sshll.u32 %s479_s13, 4  ;;  %s480_s18 = smov 128   ;;  %s251_s14 = int_to_ptr.vmem [resolvable:$true] %s250_s14 }
  0x11   :  { %215 = vmatpush.bf16.msra.mxu0 %v315_v5  ;;  %v311_v14 = vld [vmem:[#allocation8 + $0x18] sm:$0xff]  ;;  %v310_v17 = vld [vmem:[#allocation8 + $0x10] sm:$0xff]  ;;  %v309_v23 = vld [vmem:[#allocation8 + $0x8] sm:$0xff]  ;;  %s481_s19 = smov 8   ;;  %s482_s21 = smov [#allocation9]  }
  0x12   :  { %81 = vadd.xlane.f32.xlu0 %v318_v1  ;;  %77 = vst [vmem:[#allocation10] sm:$0xff] %v318_v1  ;;  %v87_v3 = vmul.f32 %v318_v1, %v318_v1  ;;  %v88_v4 = vmul.f32 %v533_v2, %v533_v2  ;;  %v308_v25 = vld [vmem:[#allocation8] sm:$0xff]  ;;  %v339_v40 = vld [vmem:[#allocation6] ss:$0 sm:$0xff]  ;;  %v340_v45 = vld [vmem:[%s557_s2] ss:$0 sm:$0xff] }
  0x13   :  { %78 = vst [vmem:[#allocation10 + $0x8] sm:$0xff] %v533_v2  ;;  %v341_v54 = vld [vmem:[%s559_s4] ss:$0 sm:$0xff]  ;;  %s237_s22 = sshll.u32 %s482_s21, 4  ;;  %s239_s25 = sshll.u32 %s560_s5, 4  ;;  %s238_s22 = int_to_ptr.vmem [resolvable:$true] %s237_s22  ;;  %s240_s25 = int_to_ptr.hbm [resolvable:$true] %s239_s25 }
  0x14   :  { %89 = vadd.xlane.f32.xlu1 %v87_v3  ;;  %258 = dma.vmem_to_hbm [thread:$0]  %s251_s14, 256, %s253_s17, [#allocation11], %s480_s18, %s480_s18, %s481_s19  }
  0x15   :  { %216 = vmatpush.bf16.msra.mxu0 %v314_v6 }
  0x19   :  { %217 = vmatpush.bf16.msra.mxu0 %v313_v7 }
  0x1a   :  { %83 = vadd.xlane.f32.xlu0 %v533_v2 }
  0x1c   :  { %91 = vadd.xlane.f32.xlu1 %v88_v4 }
  0x1d   :  { %218 = vmatpush.bf16.msra.mxu0 %v312_v8 }
  0x21   :  { %219 = vmatpush.bf16.msra.mxu0 %v311_v14 }
  0x25   :  { %220 = vmatpush.bf16.msra.mxu0 %v310_v17 }
  0x29   :  { %221 = vmatpush.bf16.msra.mxu0 %v309_v23 }
  0x2d   :  { %222 = vmatpush.bf16.msra.mxu0 %v308_v25 }
  0x85   :  { %v82_v9 = vpop.xlane.xlu0 %81 }
  0x86   :  { %v85_v10 = vmul.f32 0.0078125, %v82_v9 }
  0x87   :  { %v90_v11 = vpop.xlane.xlu1 %89 }
  0x88   :  { %v95_v12 = vmul.f32 %v85_v10, %v85_v10  ;;  %v93_v13 = vmul.f32 0.0078125, %v90_v11  ;;  %v99_v38 = vsub.f32 %v318_v1, %v85_v10 }
  0x8a   :  { %v97_v15 = vsub.f32 %v93_v13, %v95_v12 }
  0x8c   :  { %v101_v16 = vadd.f32 1e-05, %v97_v15 }
  0x8d   :  { %v84_v18 = vpop.xlane.xlu0 %83 }
  0x8e   :  { %342 = vrsqrt.f32 %v101_v16  ;;  %v86_v19 = vmul.f32 0.0078125, %v84_v18  ;;  %vm109_vm1 = vweird.f32 %v101_v16 }
  0x8f   :  { %v92_v20 = vpop.xlane.xlu1 %91 }
  0x90   :  { %v96_v21 = vmul.f32 %v86_v19, %v86_v19  ;;  %v94_v22 = vmul.f32 0.0078125, %v92_v20  ;;  %v100_v43 = vsub.f32 %v533_v2, %v86_v19 }
  0x92   :  { %v98_v24 = vsub.f32 %v94_v22, %v96_v21 }
  0x94   :  { %v343_v26 = vpop.eup %342  ;;  %v102_v27 = vadd.f32 1e-05, %v98_v24 }
  0x95   :  { %v104_v28 = vmul.f32 %v343_v26, %v101_v16  ;;  %vm110_vm0 = vweird.f32 %v343_v26 }
  0x96   :  { %344 = vrsqrt.f32 %v102_v27  ;;  %vm111_vm2 = vmor %vm109_vm1, %vm110_vm0  ;;  %vm119_vm4 = vweird.f32 %v102_v27 }
  0x97   :  { %v105_v29 = vmul.f32 %v343_v26, %v104_v28 }
  0x99   :  { %v106_v30 = vmul.f32 0.5, %v105_v29 }
  0x9b   :  { %v107_v31 = vsub.f32 1.5, %v106_v30 }
  0x9c   :  { %v345_v32 = vpop.eup %344 }
  0x9d   :  { %v108_v33 = vmul.f32 %v343_v26, %v107_v31  ;;  %v114_v34 = vmul.f32 %v345_v32, %v102_v27  ;;  %vm120_vm3 = vweird.f32 %v345_v32 }
  0x9e   :  { %vm121_vm5 = vmor %vm119_vm4, %vm120_vm3 }
  0x9f   :  { %v115_v35 = vmul.f32 %v345_v32, %v114_v34  ;;  %v112_v36 = vsel %vm111_vm2, %v343_v26, %v108_v33 }
  0xa0   :  { %v123_v41 = vmul.f32 %v112_v36, %v99_v38 }
  0xa1   :  { %v116_v37 = vmul.f32 0.5, %v115_v35 }
  0xa2   :  { %v128_v46 = vmul.f32 %v339_v40, %v123_v41 }
  0xa3   :  { %v117_v39 = vsub.f32 1.5, %v116_v37 }
  0xa4   :  { %v133_v49 = vadd.f32 %v340_v45, %v128_v46 }
  0xa5   :  { %v118_v42 = vmul.f32 %v345_v32, %v117_v39 }
  0xa7   :  { %v122_v44 = vsel %vm121_vm5, %v345_v32, %v118_v42 }
  0xa8   :  { %v124_v47 = vmul.f32 %v122_v44, %v100_v43 }
  0xaa   :  { %v129_v48 = vmul.f32 %v339_v40, %v124_v47 }
  0xac   :  { %v134_v50 = vadd.f32 %v340_v45, %v129_v48 }
  0xae   :  { %v323_v51 = vpack.c.bf16 %v134_v50, %v133_v49 }
  0xb0   :  { %324 = vst [vmem:[#allocation2] sm:$0xff] %v323_v51  }
  0xb7   :  { %v307_v52 = vld [vmem:[#allocation2] sm:$0xff] }
  0xb8   :  { %223 = vmatmul.bf16.vlgmr.msra.gmra.mxu0 %v307_v52 }
 0x135   :  { %v224_v53 = vpop.f32.mrf.mxu0 }
 0x136   :  { %v225_v56 = vadd.f32 %v341_v54, %v224_v53 }
 0x13d   :  { %v226_v55 = vpop.f32.mrf.mxu0 }
 0x13e   :  { %v227_v57 = vadd.f32 %v341_v54, %v226_v55 }
 0x140   :  { %v328_v58 = vpack.c.bf16 %v227_v57, %v225_v56 }
 0x142   :  { %329 = vst [vmem:[#allocation9] sm:$0xff] %v328_v58  }
 0x143   :  { %245 = dma.vmem_to_hbm [thread:$0]  %s238_s22, 128, %s240_s25, [#allocation5], %s476_s7, %s476_s7, %s477_s8  }
 0x144   :  { %470 = dma.done.wait [#allocation5], 128  }
 0x145   :  { %471 = vsyncadd [#allocation5], 4294967168 }
 0x146   :  { %472 = dma.done.wait [#allocation11], 256  }
 0x147   :  { %473 = vsyncadd [#allocation11], 4294967040 }
 0x148   :  { %267 = vsyncpa [#allocation4], 1 }
 0x149   :  { %268 = vsyncpa [#allocation7], 1 }
 0x14a   :  { %269 = vsyncpa [#allocation5], 1 }
 0x14b   :  { %270 = vsyncpa [#allocation11], 1 }

</bundles_post_ra>
